<compile_context>
chip_gen: v7x
topology: tpu7x:2x2x1
jax: 0.10.0
libtpu: 0.0.40
codegen_flags: <defaults>
</compile_context>

<pallas_src>
import jax
import jax.numpy as jnp
from jax.experimental import pallas as pl
from jax.experimental.pallas import tpu as pltpu


def _round_up(v, m):
    return (v + m - 1) // m * m


def timelayer_kernel(x_ref, w_ref, o_ref):
    # x_ref: (C_in, tile_t)   input dtype (cast to bf16 here for the MXU)
    # w_ref: (C_out, C_in)    bf16 (prepared once in the wrapper)
    # o_ref: (C_out, tile_t)  output dtype (same as input dtype)
    x = x_ref[...].astype(jnp.bfloat16)
    y = jnp.dot(w_ref[...], x, preferred_element_type=jnp.float32)  # f32 accumulate on MXU
    o_ref[...] = jnp.maximum(y, 0.0).astype(o_ref.dtype)            # ReLU in f32 (v5e-safe)


def prepare_weights(w):
    """One-time weight prep: squeeze the k=1 tap, cast to bf16. No padding needed."""
    if w.ndim == 3:
        w = w[:, :, 0]
    return w.astype(jnp.bfloat16)


def _choose_tile_t(B, T, max_tile=2048):
    """Lane-dense time tile: full T when small, else a multiple of 128, capped at max_tile.
    For B == 1 split time into >= 2 tiles so both v7x TensorCores get work."""
    if T > max_tile:
        return max_tile
    if B >= 2 or T < 256:
        return T                              # full-dim block: legal for any T
    return _round_up(pl.cdiv(T, 2), 128)      # B == 1: at least two time tiles


def timelayer_forward(x, w_prepared, *, tile_t=None):
    """x: (B, C_in, T). w_prepared: (C_out, C_in) bf16 from prepare_weights()."""
    B, c_in, T = x.shape
    c_out, c_in_w = w_prepared.shape
    assert c_in_w == c_in, "weight C_in must match input C_in"

    if tile_t is None:
        tile_t = _choose_tile_t(B, T)
    assert tile_t == T or tile_t % 128 == 0
    grid = (B, pl.cdiv(T, tile_t))

    out_dtype = x.dtype
    x_item = jnp.dtype(x.dtype).itemsize
    o_item = jnp.dtype(out_dtype).itemsize

    # Advisory cost for XLA's scheduler.
    cost = pl.CostEstimate(
        flops=2 * B * c_out * c_in * T,
        transcendentals=0,
        bytes_accessed=B * c_in * T * x_item + c_out * c_in * 2 + B * c_out * T * o_item,
    )

    # Double-buffered x + out tiles, resident weights, plus slack; clamp to [32, 64] MiB
    # (covers v5e's 16 MiB scoped default at large tiles, stays inside v7x's 64 MiB VMEM).
    block_bytes = c_in * tile_t * x_item + c_out * tile_t * o_item
    vmem_need = 2 * block_bytes + c_out * c_in * 2 + (2 << 20)
    vmem_limit = int(min(max(vmem_need, 32 << 20), 64 << 20))

    return pl.pallas_call(
        timelayer_kernel,
        out_shape=jax.ShapeDtypeStruct((B, c_out, T), out_dtype),
        grid_spec=pltpu.PrefetchScalarGridSpec(
            num_scalar_prefetch=0,
            grid=grid,
            in_specs=[
                # x: one batch row, one time tile per grid step (batch dim squeezed away).
                pl.BlockSpec((None, c_in, tile_t), lambda b, t: (b, 0, t)),
                # Weights: constant index map -> resident in VMEM across the whole grid.
                pl.BlockSpec((c_out, c_in), lambda b, t: (0, 0)),
            ],
            out_specs=pl.BlockSpec((None, c_out, tile_t), lambda b, t: (b, 0, t)),
        ),
        compiler_params=pltpu.CompilerParams(
            dimension_semantics=("parallel", "parallel"),
            vmem_limit_bytes=vmem_limit,
        ),
        cost_estimate=cost,
    )(x, w_prepared)


def reference_forward(x, w):
    w2d = w[:, :, 0] if w.ndim == 3 else w
    return jnp.maximum(jnp.einsum("oc,bct->bot", w2d, x), 0.0)


if __name__ == "__main__":
    key = jax.random.PRNGKey(0)
    k_x, k_w = jax.random.split(key)

    B, C_IN, C_OUT, T = 2, 4, 8, 16
    x = jax.random.normal(k_x, (B, C_IN, T), dtype=jnp.float32)

    # PyTorch Conv1d default init: U(-1/sqrt(C_in*k), 1/sqrt(C_in*k)), weight (C_out, C_in, 1).
    bound = 1.0 / (C_IN ** 0.5)
    w = jax.random.uniform(k_w, (C_OUT, C_IN, 1), jnp.float32, -bound, bound)

    # One-time weight prep (squeeze k=1 tap + bf16 cast) hoisted out of the jitted forward.
    w_prepared = prepare_weights(w)
    fwd = jax.jit(timelayer_forward)

    out = jax.block_until_ready(fwd(x, w_prepared))

    ref = reference_forward(x, w)
    assert out.shape == (B, C_OUT, T)
    # bf16 matmul inputs with f32 accumulation -> loosened tolerance vs the f32 reference.
    assert jnp.allclose(out, ref, atol=2e-2, rtol=2e-2)

    print("KERNEL_OK")
</pallas_src>

<mosaic_0001>
module attributes {stable_mosaic.version = 11 : i64} {
  func.func @timelayer_kernel(%arg0: i32, %arg1: i32, %arg2: memref<1x4x16xf32, #tpu.memory_space<vmem>>, %arg3: memref<8x4xbf16, #tpu.memory_space<vmem>>, %arg4: memref<1x8x16xf32, #tpu.memory_space<vmem>>) attributes {dimension_semantics = [#tpu.dimension_semantics<parallel>, #tpu.dimension_semantics<parallel>], iteration_bounds = array<i64: 2, 1>, scalar_prefetch = 0 : i64, scratch_operands = 0 : i64, tpu.core_type = #tpu.core_type<tc>, window_params = [{transform_indices = @transform_0, window_bounds = array<i64: 1, 4, 16>}, {pipeline_mode = #tpu.pipeline_mode<synchronous>, transform_indices = @transform_1, window_bounds = array<i64: 8, 4>}, {transform_indices = @transform_2, window_bounds = array<i64: 1, 8, 16>}]} {
    %c0 = arith.constant 0 : index
    %c0_0 = arith.constant 0 : index
    %c0_1 = arith.constant 0 : index
    %0 = vector.load %arg2[%c0, %c0_0, %c0_1] : memref<1x4x16xf32, #tpu.memory_space<vmem>>, vector<1x4x16xf32>
    %1 = vector.shape_cast %0 : vector<1x4x16xf32> to vector<4x16xf32>
    %2 = arith.truncf %1 : vector<4x16xf32> to vector<4x16xbf16>
    %c0_2 = arith.constant 0 : index
    %c0_3 = arith.constant 0 : index
    %3 = vector.load %arg3[%c0_2, %c0_3] : memref<8x4xbf16, #tpu.memory_space<vmem>>, vector<8x4xbf16>
    %cst = arith.constant dense<0.000000e+00> : vector<8x16xf32>
    %4 = tpu.matmul %3, %2, %cst {dimension_numbers = #tpu.dot_dimension_numbers<[1], [0], [0], [1], [0, 0, 1, 1], [], []>} : vector<8x4xbf16>, vector<4x16xbf16>, vector<8x16xf32> -> vector<8x16xf32>
    %cst_4 = arith.constant 0.000000e+00 : f32
    %5 = vector.broadcast %cst_4 : f32 to vector<8x16xf32>
    %6 = arith.maximumf %4, %5 : vector<8x16xf32>
    %c0_5 = arith.constant 0 : index
    %c0_6 = arith.constant 0 : index
    %c0_7 = arith.constant 0 : index
    %7 = vector.load %arg4[%c0_5, %c0_6, %c0_7] : memref<1x8x16xf32, #tpu.memory_space<vmem>>, vector<1x8x16xf32>
    %8 = vector.shape_cast %7 : vector<1x8x16xf32> to vector<8x16xf32>
    %9 = vector.shape_cast %6 : vector<8x16xf32> to vector<1x8x16xf32>
    tpu.vector_store %arg4[%c0_5, %c0_6, %c0_7], %9 {strides = array<i32>} : memref<1x8x16xf32, #tpu.memory_space<vmem>>, vector<1x8x16xf32>,
    return
  }
  func.func @transform_0(%arg0: i32, %arg1: i32) -> (i32, i32, i32) {
    %c0_i32 = arith.constant 0 : i32
    %c0_i32_0 = arith.constant 0 : i32
    return %arg0, %c0_i32, %arg1 : i32, i32, i32
  }
  func.func @transform_1(%arg0: i32, %arg1: i32) -> (i32, i32) {
    %c0_i32 = arith.constant 0 : i32
    %c0_i32_0 = arith.constant 0 : i32
    %c0_i32_1 = arith.constant 0 : i32
    return %c0_i32, %c0_i32_0 : i32, i32
  }
  func.func @transform_2(%arg0: i32, %arg1: i32) -> (i32, i32, i32) {
    %c0_i32 = arith.constant 0 : i32
    %c0_i32_0 = arith.constant 0 : i32
    return %arg0, %c0_i32, %arg1 : i32, i32, i32
  }
}

</mosaic_0001>

<bundles_post_ra>
// kernel: timelayer_forward.1
= control target key start
LH: loop header
LB: loop body
LE: loop exit
PB: predicated region body
PF: predicated region fallthrough
CT: control target
= control target key end

     0   :  { %7 = vsyncpa [#allocation3], 0  ;;  %s721_s0 = inlined_call_operand.hbm [shape: f32[2,4,16], index: 0, kind: input, shape index: {}]   ;;  %s722_s1 = inlined_call_operand.vmem [shape: bf16[8,4], index: 1, kind: input, shape index: {}]   ;;  %s723_s2 = inlined_call_operand.hbm [shape: f32[2,8,16], index: 2, kind: output, shape index: {}]  }
   0x1   :  { %9 = vsyncpa [#allocation3 + $0x1], 0 }
   0x2   :  { %10 = vsyncpa [#allocation4], 0 }
   0x3   :  { %12 = vsyncpa [#allocation4 + $0x1], 0  ;;  %s545_s9 = smov 0   ;;  %s547_s10 = smov 0  }
   0x4   :  { %s549_s11 = smov 0   ;;  %s551_s12 = smov 0  }
   0x5   :  { %s553_s13 = smov 0   ;;  %s555_s14 = smov 0  }
   0x6 LB: > { %s326_s15 = sadd.s32 4294967295, %s524_s14   ;;  %s327_s16 = sadd.s32 4294967294, %s524_s14   ;;  %s524_s14 = sphi %s555_s14, %s18_s14   ;;  %s520_s13 = sphi %s553_s13, %s739_s13   ;;  %s516_s12 = sphi %s551_s12, %s738_s12   ;;  %s512_s11 = sphi %s549_s11, %s737_s11   ;;  %s508_s10 = sphi %s547_s10, %s736_s10   ;;  %s504_s9 = sphi %s545_s9, %s735_s9  }
   0x7   : > { %s30_s17 = sadd.s32 1, %s520_s13  ;;  %s39_s18 = sadd.s32 1, %s512_s11 }
   0x8   : > { %p32_p0 = scmp.ge.s32.totalorder %s30_s17, 2  ;;  %p46_p1 = scmp.ne.s32.totalorder %s512_s11, %s508_s10 }
   0x9   : > { %p47_p2 = scmp.eq.s32.totalorder %s524_s14, 0  ;;  %p52_p3 = scmp.ne.s32.totalorder %s508_s10, %s504_s9 }
   0xa   : > { %s741_s17 = smov (%p32_p0, %s30_s17), 0  ;;  %p53_p5 = scmp.eq.s32.totalorder %s326_s15, 0 }
   0xb   : > { %p586_p4 = por %p47_p2, %p46_p1  ;;  %s34_s20 = ssub.s32 %s520_s13, %s741_s17 }
   0xc   : > { %p99_p6 = scmp.eq.s32.totalorder %s326_s15, 1  ;;  %p37_p7 = scmp.eq.s32.totalorder %s34_s20, 0 }
   0xd   : > { %p592_p8 = por %p53_p5, %p52_p3  ;;  %p105_p10 = scmp.eq.s32.totalorder %s327_s16, 1 }
   0xe   : > { %p596_p9 = por %p99_p6, %p46_p1  ;;  %p360_p13 = scmp.lt.s32.totalorder %s524_s14, 2 }
   0xf   : > { %s601_s23 = scalar_select %p37_p7, %s512_s11, %s39_s18  }
  0x10   : > { %s727_s22 = scalar_select %p596_p9, 1, 0 }
  0x11   : > { %p603_p11 = por %p105_p10, %p52_p3  ;;  %s128_s25 = sand.u32 1, %s512_s11  }
  0x12   : > { %s330_s26 = sshll.u32 %s128_s25, 2  ;;  %s331_s27 = sshll.u32 %s520_s13, 6 }
  0x13   : > { %s728_s24 = scalar_select %p603_p11, 1, 0 }
  0x14   : > { %s614_s30 = scalar_lea.hbm %s721_s0, %s331_s27  ;;  %s132_s3 = scalar_lea.vmem [#allocation2], %s330_s26 }
  0x15   : > { %s140_s4 = sshll.u32 %s132_s3, 4  ;;  %p620_p0 = pnand %p360_p13, %p586_p4  ;;  %s616_s4 = int_to_ptr.vmem [resolvable:$true] %s140_s4 }
  0x16   : > { %s129_s6 = scalar_lea.sflag [#allocation3], %s128_s25  ;;  %s412_s7 = scalar_lea.hbm %s614_s30, 64 }
  0x17   : > { %p413_p3 = scmp.ne.s32.totalorder %s614_s30, %s412_s7  ;;  %p414_p5 = pneg %p620_p0 }
  0x18   : > { %s417_s16 = scalar_lea.hbm %s721_s0, 128  ;;  %p418_p4 = scmp.lt.u32.totalorder %s614_s30, %s721_s0 }
  0x19   : > { %p415_p6 = pnand %p414_p5, %p413_p3  ;;  %p419_p10 = scmp.lt.u32.totalorder %s417_s16, %s412_s7 }
  0x1a   : > { %p421_p12 = scmp.lt.u32.totalorder %s412_s7, %s614_s30 }
  0x1b   : > { %p416_p7 = pneg %p415_p6  ;;  %p420_p13 = por %p419_p10, %p418_p4 }
  0x1d   : > { %p422_p1 = por %p421_p12, %p420_p13 }
  0x1f   : > { %p423_p2 = pnand %p422_p1, %p416_p7 }
  0x21   : > { %426 = shalt.err (!%p423_p2)
}
  0x22   : > { %s427_s20 = scalar_lea.vmem %s616_s4, 64  ;;  %s526_s25 = smov [#allocation2]  }
  0x23   : > { %p428_p3 = scmp.ne.s32.totalorder %s616_s4, %s427_s20  ;;  %s432_s26 = sshll.u32 %s526_s25, 4  ;;  %s433_s26 = int_to_ptr.vmem [resolvable:$false] %s432_s26 }
  0x24   : > { %s434_s27 = scalar_lea.vmem %s433_s26, 128  ;;  %p435_p9 = scmp.lt.s32.totalorder %s616_s4, %s433_s26 }
  0x25   : > { %p430_p6 = pnand %p428_p3, %p414_p5  ;;  %p436_p4 = scmp.lt.s32.totalorder %s434_s27, %s427_s20 }
  0x27   : > { %p431_p11 = pneg %p430_p6  ;;  %p437_p10 = por %p436_p4, %p435_p9 }
  0x29   : > { %p438_p12 = pnand %p437_p10, %p431_p11 }
  0x2b   : > { %441 = shalt.err (!%p438_p12)
}
  0x2c   : > { %355 = dma.hbm_to_vmem [thread:$0]  (!%p620_p0), %s614_s30, 64, %s616_s4, %s129_s6  }
  0x2d   : > { %p730_p1 = scmp.lt.s32.totalorder %s524_s14, 3  ;;  %p731_p2 = scmp.ge.s32.totalorder %s524_s14, 1 }
  0x2f   : > { %p146_p5 = pnand %p731_p2, %p730_p1 }
  0x30   : > { %s656_s28 = sand.u32 (!%p146_p5), 1, %s508_s10  }
  0x31   : > { %149 = sbr.rel (%p146_p5) target bundleno = 292 (0x124), region = 28  ;;  %s333_s29 = sshll.u32 (!%p146_p5), %s656_s28, 2 }
  0x32   : > { %s152_s3 = scalar_lea.sflag (!%p146_p5), [#allocation3], %s656_s28  ;;  %s155_s7 = scalar_lea.vmem (!%p146_p5), [#allocation2], %s333_s29 }
  0x38   : > { %495 = dma.done.wait (%p592_p8), %s152_s3, 64  }
  0x39   : > { %497 = vsyncadd (%p592_p8), %s152_s3, 4294967232  ;;  %v527_v0 = vmov 0.0   ;;  %vm528_vm0 = vmmov 0   ;;  %v177_v1 = vld [vmem:[%s155_s7] sm:$0xf]  ;;  %vm184_vm1 = vcmask 1041408  }
  0x3a   : > { %342 = vmatprep.subr.bf16.mxu0 %v527_v0  ;;  %344 = vmatprep.mubr.msk.bf16.mxu0 %vm528_vm0, %v527_v0  ;;  %v178_v2 = vpack.c.bf16 %v177_v1, %v177_v1  ;;  %v179_v4 = vld [vmem:[%s722_s1] sm:$0xf]  ;;  %vm180_vm2 = vcmask 31744   ;;  %s334_s21 = sshll.u32 %s656_s28, 3  ;;  %s337_s5 = sshll.u32 %s516_s12, 7  ;;  %vm229_vm3 = vcmask 130048  }
  0x3b   : > { %s175_s6 = scalar_lea.vmem [#allocation5], %s334_s21  ;;  %s672_s18 = scalar_lea.hbm %s723_s2, %s337_s5 }
  0x3c   : > { %v186_v3 = vsel %vm184_vm1, %v178_v2, 0  ;;  %s246_s8 = sshll.u32 %s175_s6, 4  ;;  %s232_s12 = scalar_lea.sflag [#allocation4], %s656_s28  ;;  %s674_s8 = int_to_ptr.vmem [resolvable:$true] %s246_s8 }
  0x3d   : > { %343 = vmatpush3.bf16.msra.mxu0 %v186_v3  ;;  %s442_s19 = scalar_lea.vmem %s674_s8, 128  ;;  %p732_p9 = scmp.ne.s32.totalorder %s727_s22, 0 }
  0x3e   : > { %p443_p8 = scmp.ne.s32.totalorder %s674_s8, %s442_s19  ;;  %s529_s20 = smov [#allocation5]  }
  0x3f   : > { %s446_s25 = sshll.u32 %s529_s20, 4  ;;  %s447_s25 = int_to_ptr.vmem [resolvable:$false] %s446_s25 }
  0x40   : > { %345 = vmatmul.mubr.msk.bf16.vlgmr.msra.gmra.mrb[0].mxu0 %vm180_vm2, %v179_v4  ;;  %p444_p11 = pnand %p443_p8, %p732_p9  ;;  %s448_s26 = scalar_lea.vmem %s447_s25, 256 }
  0x41   : > { %p449_p7 = scmp.lt.s32.totalorder %s674_s8, %s447_s25  ;;  %p450_p13 = scmp.lt.s32.totalorder %s448_s26, %s442_s19 }
  0x42   : > { %p445_p0 = pneg %p444_p11 }
  0x43   : > { %p451_p3 = por %p450_p13, %p449_p7 }
  0x45   : > { %p452_p6 = pnand %p451_p3, %p445_p0 }
 0x113   : > { %v222_v5 = vpop.f32.mrb[0].mxu0 }
 0x114   : > { %v228_v6 = vmax.f32 %v222_v5, 0.0  ;;  %v346_v7 = vpop.f32.mrb[1].mxu0 }
 0x115   : > { %v225_v8 = vpop.f32.mrb[2].mxu0 }
 0x116   : > { %v347_v9 = vpop.f32.mrb[3].mxu0  ;;  %230 = vst.msk [vmem:[%s175_s6] sm:$0xff] %vm229_vm3, %v228_v6 }
 0x117   : > { %455 = shalt.err (!%p452_p6)
}
 0x118   : > { %s456_s27 = scalar_lea.hbm %s672_s18, 128  ;;  %s460_s3 = scalar_lea.hbm %s723_s2, 256 }
 0x119   : > { %p457_p4 = scmp.ne.s32.totalorder %s672_s18, %s456_s27  ;;  %p461_p1 = scmp.lt.u32.totalorder %s672_s18, %s723_s2 }
 0x11a   : > { %p462_p2 = scmp.lt.u32.totalorder %s460_s3, %s456_s27  ;;  %p464_p8 = scmp.lt.u32.totalorder %s456_s27, %s672_s18 }
 0x11b   : > { %p458_p10 = pnand %p457_p4, %p732_p9 }
 0x11c   : > { %p463_p5 = por %p462_p2, %p461_p1 }
 0x11d   : > { %p459_p12 = pneg %p458_p10 }
 0x11e   : > { %p465_p11 = por %p464_p8, %p463_p5 }
 0x120   : > { %p466_p0 = pnand %p465_p11, %p459_p12 }
 0x122   : > { %469 = shalt.err (!%p466_p0)
}
 0x123   : > { %350 = dma.vmem_to_hbm [thread:$0]  (%p732_p9), %s674_s8, 128, %s672_s18, %s232_s12  }
 0x124 PF: > { %s258_s4 = sand.u32 1, %s504_s9   ;;  %p733_p7 = scmp.ne.s32.totalorder %s728_s24, 0 }
 0x125   : > { %p734_p13 = scmp.ge.s32.totalorder %s524_s14, 2  ;;  %s259_s21 = scalar_lea.sflag [#allocation4], %s258_s4 }
 0x127   : > { %p357_p3 = pnand %p734_p13, %p733_p7 }
 0x129   : > { %499 = dma.done.wait (!%p357_p3), %s259_s21, 128  }
 0x12a   : > { %501 = vsyncadd (!%p357_p3), %s259_s21, 4294967168  ;;  %s18_s14 = sadd.s32 1, %s524_s14   ;;  %s735_s9 = smov %s508_s10 }
 0x12b   : > { %p15_p6 = scmp.ge.s32.totalorder %s18_s14, 4   ;;  %s736_s10 = smov %s512_s11 }
 0x12c   : > { %s737_s11 = smov %s601_s23  ;;  %s738_s12 = smov %s520_s13 }
 0x12d   : > { %s739_s13 = smov %s741_s17  ;;  %17 = sbr.rel (!%p15_p6) target bundleno = 6 (0x6), region = 73 }
 0x134   :  { %264 = vsyncpa [#allocation3], 1 }
 0x135   :  { %266 = vsyncpa [#allocation3 + $0x1], 1 }
 0x136   :  { %267 = vsyncpa [#allocation4], 1 }
 0x137   :  { %269 = vsyncpa [#allocation4 + $0x1], 1 }

</bundles_post_ra>
